<compile_context>
chip_gen: v7x
topology: tpu7x:2x2x1
jax: 0.10.0
libtpu: 0.0.40
codegen_flags: <defaults>
</compile_context>

<pallas_src>
import math

import jax
import jax.numpy as jnp
from jax.experimental import pallas as pl
from jax.experimental.pallas import tpu as pltpu


# ------------------------------ Pallas kernel -------------------------------
def self_attention_kernel(x_ref, wb_ref, o_ref):
    # x_ref : [1, N, D] block (one batch element)
    # wb_ref: [D+1, 9]  packed (column-permuted fused-QKV weight ; bias row)
    _, N, D = x_ref.shape
    x = x_ref[0].astype(jnp.float32)                       # [N, D]

    wb = wb_ref[...].astype(jnp.float32)                   # [D+1, 9]
    w = wb[:D, :]                                          # [D, 9]
    b = wb[D:D + 1, :]                                     # [1, 9]

    # Fused QKV projection: one MXU pass  [N, D] x [D, 9] -> [N, 9].
    qkv = jnp.dot(x, w, preferred_element_type=jnp.float32) + b
    # Columns were permuted host-side so these contiguous slices equal the
    # module's qkv.view(N, 3, D)[..., 0/1/2].
    q = qkv[:, 0:3]                                        # [N, 3]
    k = qkv[:, 3:6]                                        # [N, 3]
    v = qkv[:, 6:9]                                        # [N, 3]

    # scores = q @ k^T / sqrt(pixel_dim)   (dot_general -> no explicit .T)
    s = jax.lax.dot_general(q, k, (((1,), (1,)), ((), ())),
                            preferred_element_type=jnp.float32)      # [N, N]
    s = s * (1.0 / math.sqrt(D))

    # Numerically-stable row softmax; reciprocal goes to the EUP slot.
    m = jnp.max(s, axis=-1, keepdims=True)
    e = jnp.exp(s - m)
    denom = jnp.sum(e, axis=-1, keepdims=True)
    p = e * pl.reciprocal(denom, approx=True)

    # Attention output + residual  (requires pixel_dim == 3, like the module).
    y = jnp.dot(p, v, preferred_element_type=jnp.float32) + x        # [N, D]
    o_ref[0] = y.astype(o_ref.dtype)


# ------------------------------ host helpers --------------------------------
def _pack_qkv_params(w_t, b):
    """Pack the fused-QKV Linear params for the kernel.

    PyTorch computes qkv = x @ W^T + b ([N, 3*D]) and then takes
    view(N, 3, D)[..., j], i.e. columns {0,D,2D} for q, {1,D+1,2D+1} for k,
    {2,D+2,2D+2} for v.  We reorder columns host-side to [q | k | v] so the
    kernel slices contiguous lanes, and append the bias as one extra weight
    row so only a single small VMEM operand (one DMA descriptor) is needed.
    """
    D = w_t.shape[0]
    cols = jnp.asarray([r * D + j for j in range(3) for r in range(3)],
                       dtype=jnp.int32)                    # [9]
    w_sel = jnp.take(w_t, cols, axis=1)                    # [D, 9]
    b_sel = jnp.take(b, cols, axis=0)                      # [9]
    return jnp.concatenate([w_sel, b_sel[None, :]], axis=0)  # [D+1, 9]


@jax.jit
def self_attention_forward(pixel_features, w_t, b):
    """pixel_features: [B, N, D]; w_t: [D, 3D] (= torch qkv.weight.T); b: [3D]."""
    B, N, D = pixel_features.shape
    assert D == 3, ("the module's qkv[..., j] indexing + residual add only "
                    "broadcast when pixel_dim == 3")
    wb = _pack_qkv_params(w_t, b)

    cost = pl.CostEstimate(
        flops=B * (2 * N * D * 9 + 2 * N * N * 3 + 2 * N * N * 3),
        transcendentals=B * N * N,                         # exp in softmax
        bytes_accessed=2 * B * N * D * 4 + wb.size * 4,
    )

    return pl.pallas_call(
        self_attention_kernel,
        out_shape=jax.ShapeDtypeStruct((B, N, D), pixel_features.dtype),
        grid=(B,),
        in_specs=[
            pl.BlockSpec((1, N, D), lambda bi: (bi, 0, 0)),        # tokens
            pl.BlockSpec(wb.shape, lambda bi: (0, 0)),             # packed W|b
        ],
        out_specs=pl.BlockSpec((1, N, D), lambda bi: (bi, 0, 0)),
        compiler_params=pltpu.CompilerParams(
            dimension_semantics=("parallel",)),                    # 2 TCs on v7x
        cost_estimate=cost,
    )(pixel_features, wb)


# --------------------------- pure-JAX reference ------------------------------
def reference_forward(pixel_features, w_t, b):
    """Literal JAX transcription of the PyTorch module's forward."""
    B, N, D = pixel_features.shape
    x = pixel_features.astype(jnp.float32)
    qkv = x @ w_t + b                                      # [B, N, 3*D]
    qkv = qkv.reshape(B, N, 3, D)
    q, k, v = qkv[..., 0], qkv[..., 1], qkv[..., 2]        # [B, N, 3] each
    scores = jnp.einsum('bnc,bmc->bnm', q, k) / math.sqrt(D)
    weights = jax.nn.softmax(scores, axis=-1)
    return jnp.einsum('bnm,bmc->bnc', weights, v) + x


# --------------------------------- main --------------------------------------
if __name__ == "__main__":
    key = jax.random.PRNGKey(0)
    kx, kw, kb = jax.random.split(key, 3)

    # pixel_features: [batch, num_pixels, pixel_dim]; pixel_dim must be 3
    # for the module's residual add (see faithfulness note above).
    B, N, D = 2, 128, 3
    bound = 1.0 / math.sqrt(D)                 # nn.Linear(D, 3D) init bound
    x = jax.random.normal(kx, (B, N, D), jnp.float32)
    w_t = jax.random.uniform(kw, (D, 3 * D), jnp.float32, -bound, bound)
    b = jax.random.uniform(kb, (3 * D,), jnp.float32, -bound, bound)

    out = self_attention_forward(x, w_t, b)
    out = jax.block_until_ready(out)

    ref = reference_forward(x, w_t, b)
    assert out.shape == x.shape
    err = float(jnp.max(jnp.abs(out - ref)))
    assert err < 5e-3, f"mismatch vs pure-JAX reference: max abs err = {err}"

    print("KERNEL_OK")
</pallas_src>

<mosaic_0001>
module attributes {stable_mosaic.version = 11 : i64} {
  func.func @self_attention_kernel(%arg0: i32, %arg1: memref<1x128x3xf32, #tpu.memory_space<vmem>>, %arg2: memref<4x9xf32, #tpu.memory_space<vmem>>, %arg3: memref<1x128x3xf32, #tpu.memory_space<vmem>>) attributes {dimension_semantics = [#tpu.dimension_semantics<parallel>], iteration_bounds = array<i64: 2>, scalar_prefetch = 0 : i64, scratch_operands = 0 : i64, tpu.core_type = #tpu.core_type<tc>, window_params = [{transform_indices = @transform_0, window_bounds = array<i64: 1, 128, 3>}, {pipeline_mode = #tpu.pipeline_mode<synchronous>, transform_indices = @transform_1, window_bounds = array<i64: 4, 9>}, {transform_indices = @transform_2, window_bounds = array<i64: 1, 128, 3>}]} {
    %c0 = arith.constant 0 : index
    %c0_0 = arith.constant 0 : index
    %c0_1 = arith.constant 0 : index
    %0 = vector.load %arg1[%c0, %c0_0, %c0_1] : memref<1x128x3xf32, #tpu.memory_space<vmem>>, vector<1x128x3xf32>
    %1 = vector.shape_cast %0 : vector<1x128x3xf32> to vector<128x3xf32>
    %c0_2 = arith.constant 0 : index
    %c0_3 = arith.constant 0 : index
    %2 = vector.load %arg2[%c0_2, %c0_3] : memref<4x9xf32, #tpu.memory_space<vmem>>, vector<4x9xf32>
    %3 = vector.extract_strided_slice %2 {offsets = [0, 0], sizes = [3, 9], strides = [1, 1]} : vector<4x9xf32> to vector<3x9xf32>
    %4 = vector.extract_strided_slice %2 {offsets = [3, 0], sizes = [1, 9], strides = [1, 1]} : vector<4x9xf32> to vector<1x9xf32>
    %cst = arith.constant dense<0.000000e+00> : vector<128x9xf32>
    %5 = tpu.matmul %1, %3, %cst {dimension_numbers = #tpu.dot_dimension_numbers<[1], [0], [0], [1], [0, 0, 1, 1], [], []>} : vector<128x3xf32>, vector<3x9xf32>, vector<128x9xf32> -> vector<128x9xf32>
    %6 = vector.broadcast %4 : vector<1x9xf32> to vector<128x9xf32>
    %7 = arith.addf %5, %6 : vector<128x9xf32>
    %8 = vector.extract_strided_slice %7 {offsets = [0, 0], sizes = [128, 3], strides = [1, 1]} : vector<128x9xf32> to vector<128x3xf32>
    %9 = vector.extract_strided_slice %7 {offsets = [0, 3], sizes = [128, 3], strides = [1, 1]} : vector<128x9xf32> to vector<128x3xf32>
    %10 = vector.extract_strided_slice %7 {offsets = [0, 6], sizes = [128, 3], strides = [1, 1]} : vector<128x9xf32> to vector<128x3xf32>
    %cst_4 = arith.constant dense<0.000000e+00> : vector<128x128xf32>
    %11 = tpu.matmul %8, %9, %cst_4 {dimension_numbers = #tpu.dot_dimension_numbers<[1], [1], [0], [0], [0, 0, 1, 0], [], []>} : vector<128x3xf32>, vector<128x3xf32>, vector<128x128xf32> -> vector<128x128xf32>
    %cst_5 = arith.constant 0.577350259 : f32
    %12 = vector.broadcast %cst_5 : f32 to vector<128x128xf32>
    %13 = arith.mulf %11, %12 : vector<128x128xf32>
    %cst_6 = arith.constant dense<0xFF800000> : vector<128xf32>
    %14 = vector.multi_reduction <maximumf>, %13, %cst_6 [1] : vector<128x128xf32> to vector<128xf32>
    %15 = vector.shape_cast %14 : vector<128xf32> to vector<128x1xf32>
    %16 = vector.broadcast %15 : vector<128x1xf32> to vector<128x128xf32>
    %17 = arith.subf %13, %16 : vector<128x128xf32>
    %18 = math.exp %17 : vector<128x128xf32>
    %cst_7 = arith.constant dense<0.000000e+00> : vector<128xf32>
    %19 = vector.multi_reduction <add>, %18, %cst_7 [1] : vector<128x128xf32> to vector<128xf32>
    %20 = vector.shape_cast %19 : vector<128xf32> to vector<128x1xf32>
    %21 = tpu.reciprocal %20 {approx = true} : vector<128x1xf32> -> vector<128x1xf32>
    %22 = vector.broadcast %21 : vector<128x1xf32> to vector<128x128xf32>
    %23 = arith.mulf %18, %22 : vector<128x128xf32>
    %cst_8 = arith.constant dense<0.000000e+00> : vector<128x3xf32>
    %24 = tpu.matmul %23, %10, %cst_8 {dimension_numbers = #tpu.dot_dimension_numbers<[1], [0], [0], [1], [0, 0, 1, 1], [], []>} : vector<128x128xf32>, vector<128x3xf32>, vector<128x3xf32> -> vector<128x3xf32>
    %25 = arith.addf %24, %1 : vector<128x3xf32>
    %c0_9 = arith.constant 0 : index
    %c0_10 = arith.constant 0 : index
    %c0_11 = arith.constant 0 : index
    %26 = vector.load %arg3[%c0_9, %c0_10, %c0_11] : memref<1x128x3xf32, #tpu.memory_space<vmem>>, vector<1x128x3xf32>
    %27 = vector.shape_cast %26 : vector<1x128x3xf32> to vector<128x3xf32>
    %28 = vector.shape_cast %25 : vector<128x3xf32> to vector<1x128x3xf32>
    tpu.vector_store %arg3[%c0_9, %c0_10, %c0_11], %28 {strides = array<i32>} : memref<1x128x3xf32, #tpu.memory_space<vmem>>, vector<1x128x3xf32>,
    return
  }
  func.func @transform_0(%arg0: i32) -> (i32, i32, i32) {
    %c0_i32 = arith.constant 0 : i32
    %c0_i32_0 = arith.constant 0 : i32
    %c0_i32_1 = arith.constant 0 : i32
    return %arg0, %c0_i32, %c0_i32_0 : i32, i32, i32
  }
  func.func @transform_1(%arg0: i32) -> (i32, i32) {
    %c0_i32 = arith.constant 0 : i32
    %c0_i32_0 = arith.constant 0 : i32
    %c0_i32_1 = arith.constant 0 : i32
    return %c0_i32, %c0_i32_0 : i32, i32
  }
  func.func @transform_2(%arg0: i32) -> (i32, i32, i32) {
    %c0_i32 = arith.constant 0 : i32
    %c0_i32_0 = arith.constant 0 : i32
    %c0_i32_1 = arith.constant 0 : i32
    return %arg0, %c0_i32, %c0_i32_0 : i32, i32, i32
  }
}

</mosaic_0001>

<bundles_post_ra>
// kernel: self_attention_forward.1
= control target key start
LH: loop header
LB: loop body
LE: loop exit
PB: predicated region body
PF: predicated region fallthrough
CT: control target
= control target key end

     0   :  { %s1584_s9 = smov 0   ;;  %s1969_s0 = inlined_call_operand.vmem [shape: f32[2,128,3], index: 0, kind: input, shape index: {}]   ;;  %s1970_s1 = inlined_call_operand.vmem [shape: f32[4,9], index: 1, kind: input, shape index: {}]   ;;  %s1971_s2 = inlined_call_operand.vmem [shape: f32[2,128,3], index: 2, kind: output, shape index: {}]  }
   0x1 LB: > { %s1044_s10 = sadd.s32 4294967295, %s1565_s9   ;;  %p1048_p0 = scmp.ge.s32.totalorder %s1565_s9, 1  ;;  %s1565_s9 = sphi %s1584_s9, %s12_s9  }
   0x2   : > { %p112_p1 = scmp.lt.s32.totalorder %s1565_s9, 3 }
   0x4   : > { %p113_p2 = pnand %p1048_p0, %p112_p1 }
   0x5   : > { %v160_v0 = vld [vmem:[%s1970_s1] sm:$0xf] (!%p113_p2)  ;;  %vm214_vm0 = vcmask (!%p113_p2), 1042432   ;;  %p134_p3 = scmp.lt.s32.totalorder (!%p113_p2), %s1044_s10, 1  ;;  %vm165_vm1 = vcmask (!%p113_p2), 23552   ;;  %v161_v9 = vlaneseq (!%p113_p2)  ;;  %s1567_s17 = smov (!%p113_p2), 125  }
   0x6   : > { %116 = sbr.rel (%p113_p2) target bundleno = 1234 (0x4d2), region = 28  ;;  %1187 = vmatprep.subr.msk.mxu0 (!%p113_p2), %vm214_vm0, %v160_v0  ;;  %s1568_s18 = smov (!%p113_p2), 122   ;;  %vm1715_vm2 = vmpackc.low (!%p113_p2), %vm165_vm1, %vm165_vm1 }
   0x7   : > { %1188 = vmatpush3.msk.msra.mxu0 (!%p113_p2), %vm214_vm0, %v160_v0  ;;  %v162_v10 = vshrl.u32 (!%p113_p2), %v161_v9, 7 }
   0x9   : > { %v163_v11 = vsub.s32 (!%p113_p2), 3, %v162_v10 }
   0xb   : > { %v164_v12 = vrot.slane (!%p113_p2), %v160_v0, %v163_v11 }
   0xd   : > { %s1975_s10 = smov (!%p134_p3, %s1044_s10), 1 }
   0xe   : > { %s1104_s13 = sshll.u32 %s1975_s10, 7 }
   0xf   : > { %s1603_s16 = scalar_lea.vmem %s1969_s0, %s1104_s13  ;;  %s1920_s21 = scalar_lea.vmem %s1971_s2, %s1104_s13 }
  0x10   : > { %v1606_v1 = vld [vmem:[%s1603_s16 + $0x8] sm:$0xff]  ;;  %v1611_v2 = vld [vmem:[%s1603_s16 + $0x18] sm:$0xff] }
  0x11   : > { %1190 = vmatmul.mubr.msk.f32.vlgmr.msra.gmra.mrb[0].mxu0 %vm165_vm1, %v1606_v1  ;;  %v1616_v3 = vld [vmem:[%s1603_s16 + $0x28] sm:$0xff]  ;;  %v1621_v4 = vld [vmem:[%s1603_s16 + $0x38] sm:$0xff] }
  0x12   : > { %v1626_v5 = vld [vmem:[%s1603_s16 + $0x48] sm:$0xff]  ;;  %v1631_v6 = vld [vmem:[%s1603_s16 + $0x58] sm:$0xff] }
  0x13   : > { %v1636_v7 = vld [vmem:[%s1603_s16 + $0x68] sm:$0xff]  ;;  %v1641_v8 = vld [vmem:[%s1603_s16 + $0x78] sm:$0xff] }
  0x15   : > { %1193 = vmatmul.mubr.msk.f32.gmra.mrb[2].mxu0 %vm165_vm1, %v1611_v2 }
  0x19   : > { %1196 = vmatmul.mubr.msk.f32.gmra.mrb[4].mxu0 %vm165_vm1, %v1616_v3 }
  0x1d   : > { %1199 = vmatmul.mubr.msk.f32.gmra.mrb[6].mxu0 %vm165_vm1, %v1621_v4 }
  0x21   : > { %1202 = vmatmul.mubr.msk.f32.gmra.mrb[8].mxu0 %vm165_vm1, %v1626_v5 }
  0x25   : > { %1205 = vmatmul.mubr.msk.f32.gmra.mrb[10].mxu0 %vm165_vm1, %v1631_v6 }
  0x29   : > { %1208 = vmatmul.mubr.msk.f32.gmra.mrb[12].mxu0 %vm165_vm1, %v1636_v7 }
  0x2d   : > { %1211 = vmatmul.mubr.msk.f32.gmra.mrb[14].mxu0 %vm165_vm1, %v1641_v8 }
  0xe4   : > { %v1191_v13 = vpop.f32.mrb[0].mxu0 }
  0xe5   : > { %v1645_v14 = vadd.f32 %v1191_v13, %v164_v12  ;;  %v284_v15 = vpop.f32.mrb[1].mxu0 }
  0xe6   : > { %v285_v16 = vadd.f32 %v284_v15, %v164_v12 }
  0xe8   : > { %1245 = vmatprep.mubr.msk.f32.mxu1 %vm165_vm1, %v285_v16  ;;  %v1415_v17 = vpack.i.bf16 %v1645_v14, %v285_v16  ;;  %v1194_v18 = vpop.f32.mrb[2].mxu0 }
  0xe9   : > { %v1649_v19 = vadd.f32 %v1194_v18, %v164_v12  ;;  %v294_v20 = vpop.f32.mrb[3].mxu0 }
  0xea   : > { %1416 = vrot.lane.b32.xlu0 %v1415_v17, %s1567_s17  ;;  %v1652_v21 = vadd.f32 %v294_v20, %v164_v12 }
  0xec   : > { %v1420_v22 = vpack.i.bf16 %v1649_v19, %v1652_v21  ;;  %v1197_v23 = vpop.f32.mrb[4].mxu0 }
  0xed   : > { %v1656_v24 = vadd.f32 %v1197_v23, %v164_v12  ;;  %v304_v25 = vpop.f32.mrb[5].mxu0 }
  0xee   : > { %1421 = vrot.lane.b32.xlu0 %v1420_v22, %s1567_s17  ;;  %v1659_v26 = vadd.f32 %v304_v25, %v164_v12 }
  0xf0   : > { %v1200_v27 = vpop.f32.mrb[6].mxu0  ;;  %v1425_v28 = vpack.i.bf16 %v1656_v24, %v1659_v26 }
  0xf1   : > { %v1663_v29 = vadd.f32 %v1200_v27, %v164_v12  ;;  %v314_v30 = vpop.f32.mrb[7].mxu0 }
  0xf2   : > { %v1665_v31 = vadd.f32 %v314_v30, %v164_v12  ;;  %1426 = vrot.lane.b32.xlu1 %v1425_v28, %s1567_s17 }
  0xf4   : > { %v1203_v32 = vpop.f32.mrb[8].mxu0  ;;  %v1430_v33 = vpack.i.bf16 %v1663_v29, %v1665_v31 }
  0xf5   : > { %v1670_v34 = vadd.f32 %v1203_v32, %v164_v12  ;;  %v324_v35 = vpop.f32.mrb[9].mxu0 }
  0xf6   : > { %v1672_v36 = vadd.f32 %v324_v35, %v164_v12  ;;  %1431 = vrot.lane.b32.xlu1 %v1430_v33, %s1567_s17 }
  0xf8   : > { %v1206_v37 = vpop.f32.mrb[10].mxu0  ;;  %v1435_v38 = vpack.i.bf16 %v1670_v34, %v1672_v36 }
  0xf9   : > { %v1677_v39 = vadd.f32 %v1206_v37, %v164_v12  ;;  %v334_v40 = vpop.f32.mrb[11].mxu0 }
  0xfa   : > { %v1679_v41 = vadd.f32 %v334_v40, %v164_v12  ;;  %1436 = vrot.lane.b32.xlu0 %v1435_v38, %s1567_s17 }
  0xfc   : > { %v1209_v42 = vpop.f32.mrb[12].mxu0  ;;  %v1684_v43 = vpack.i.bf16 %v1677_v39, %v1679_v41 }
  0xfd   : > { %v1686_v44 = vadd.f32 %v1209_v42, %v164_v12  ;;  %v344_v45 = vpop.f32.mrb[13].mxu0 }
  0xfe   : > { %v1688_v46 = vadd.f32 %v344_v45, %v164_v12  ;;  %1441 = vrot.lane.b32.xlu1 %v1684_v43, %s1567_s17 }
 0x100   : > { %v1212_v47 = vpop.f32.mrb[14].mxu0  ;;  %v1694_v48 = vpack.i.bf16 %v1686_v44, %v1688_v46 }
 0x101   : > { %v1696_v49 = vadd.f32 %v1212_v47, %v164_v12  ;;  %v354_v50 = vpop.f32.mrb[15].mxu0 }
 0x102   : > { %v1698_v51 = vadd.f32 %v354_v50, %v164_v12  ;;  %1446 = vrot.lane.b32.xlu0 %v1694_v48, %s1567_s17 }
 0x104   : > { %v1704_v52 = vpack.i.bf16 %v1696_v49, %v1698_v51 }
 0x106   : > { %1451 = vrot.lane.b32.xlu1 %v1704_v52, %s1567_s17  ;;  %1461 = vrot.lane.b32.xlu0 %v1420_v22, %s1568_s18 }
 0x10a   : > { %1456 = vrot.lane.b32.xlu1 %v1415_v17, %s1568_s18  ;;  %1471 = vrot.lane.b32.xlu0 %v1430_v33, %s1568_s18 }
 0x10e   : > { %1466 = vrot.lane.b32.xlu1 %v1425_v28, %s1568_s18 }
 0x112   : > { %1476 = vrot.lane.b32.xlu1 %v1435_v38, %s1568_s18 }
 0x15c   : > { %v1417_v53 = vpop.permute.xlu0 %1416 }
 0x15d   : > { %v1419_v54 = vunpack.i.h.bf16 %v1417_v53  ;;  %v1418_v55 = vunpack.i.l.bf16 %v1417_v53 }
 0x15f   : > { %v1325_v57 = vpack.c.bf16 %v1419_v54, %v1418_v55 }
 0x160   : > { %v1422_v58 = vpop.permute.xlu0 %1421 }
 0x161   : > { %1327 = vmatprep.subr.msk.bf16.mxu1 %vm1715_vm2, %v1325_v57  ;;  %v1424_v59 = vunpack.i.h.bf16 %v1422_v58  ;;  %v1423_v60 = vunpack.i.l.bf16 %v1422_v58 }
 0x162   : > { %1330 = vmatpush3.bf16.xpose.msk.msra.mxu1 %vm1715_vm2, %v1325_v57 }
 0x163   : > { %v1331_v61 = vpack.c.bf16 %v1424_v59, %v1423_v60 }
 0x164   : > { %v1427_v62 = vpop.permute.xlu1 %1426 }
 0x165   : > { %1333 = vmatprep.subr.msk.bf16.mxu1 %vm1715_vm2, %v1331_v61  ;;  %v1429_v63 = vunpack.i.h.bf16 %v1427_v62  ;;  %v1428_v0 = vunpack.i.l.bf16 %v1427_v62 }
 0x167   : > { %v1337_v9 = vpack.c.bf16 %v1429_v63, %v1428_v0 }
 0x168   : > { %v1432_v10 = vpop.permute.xlu1 %1431 }
 0x169   : > { %v1434_v11 = vunpack.i.h.bf16 %v1432_v10  ;;  %v1433_v12 = vunpack.i.l.bf16 %v1432_v10 }
 0x16a   : > { %1336 = vmatpush3.bf16.xpose.msk.msra.mxu1 %vm1715_vm2, %v1331_v61 }
 0x16b   : > { %1339 = vmatprep.subr.msk.bf16.mxu1 %vm1715_vm2, %v1337_v9  ;;  %v1343_v15 = vpack.c.bf16 %v1434_v11, %v1433_v12 }
 0x16c   : > { %v1437_v13 = vpop.permute.xlu0 %1436 }
 0x16d   : > { %v1439_v17 = vunpack.i.h.bf16 %v1437_v13  ;;  %v1438_v18 = vunpack.i.l.bf16 %v1437_v13 }
 0x16f   : > { %v1349_v22 = vpack.c.bf16 %v1439_v17, %v1438_v18 }
 0x170   : > { %v1442_v16 = vpop.permute.xlu1 %1441 }
 0x171   : > { %v1444_v27 = vunpack.i.h.bf16 %v1442_v16  ;;  %v1443_v28 = vunpack.i.l.bf16 %v1442_v16 }
 0x172   : > { %1342 = vmatpush3.bf16.xpose.msk.msra.mxu1 %vm1715_vm2, %v1337_v9 }
 0x173   : > { %1345 = vmatprep.subr.msk.bf16.mxu1 %vm1715_vm2, %v1343_v15  ;;  %v1355_v38 = vpack.c.bf16 %v1444_v27, %v1443_v28 }
 0x174   : > { %v1447_v20 = vpop.permute.xlu0 %1446 }
 0x175   : > { %v1449_v54 = vunpack.i.h.bf16 %v1447_v20  ;;  %v1448_v55 = vunpack.i.l.bf16 %v1447_v20 }
 0x177   : > { %v1361_v61 = vpack.c.bf16 %v1449_v54, %v1448_v55 }
 0x178   : > { %v1452_v23 = vpop.permute.xlu1 %1451  ;;  %v1462_v25 = vpop.permute.xlu0 %1461 }
 0x179   : > { %v1464_v32 = vunpack.i.h.bf16 %v1462_v25  ;;  %v1463_v33 = vunpack.i.l.bf16 %v1462_v25  ;;  %v1454_v9 = vunpack.i.h.bf16 %v1452_v23  ;;  %v1453_v10 = vunpack.i.l.bf16 %v1452_v23 }
 0x17a   : > { %1348 = vmatpush3.bf16.xpose.msk.msra.mxu1 %vm1715_vm2, %v1343_v15 }
 0x17b   : > { %1351 = vmatprep.subr.msk.bf16.mxu1 %vm1715_vm2, %v1349_v22  ;;  %v1377_v45 = vpack.c.bf16 %v1464_v32, %v1463_v33  ;;  %v1367_v12 = vpack.c.bf16 %v1454_v9, %v1453_v10 }
 0x17c   : > { %v1457_v30 = vpop.permute.xlu1 %1456  ;;  %v1472_v53 = vpop.permute.xlu0 %1471 }
 0x17d   : > { %v1459_v35 = vunpack.i.h.bf16 %v1457_v30  ;;  %v1458_v37 = vunpack.i.l.bf16 %v1457_v30  ;;  %v1474_v57 = vunpack.i.h.bf16 %v1472_v53  ;;  %v1473_v58 = vunpack.i.l.bf16 %v1472_v53 }
 0x17f   : > { %v1373_v40 = vpack.c.bf16 %v1459_v35, %v1458_v37  ;;  %v1385_v62 = vpack.c.bf16 %v1474_v57, %v1473_v58 }
 0x180   : > { %v1467_v42 = vpop.permute.xlu1 %1466 }
 0x181   : > { %v1469_v47 = vunpack.i.h.bf16 %v1467_v42  ;;  %v1468_v50 = vunpack.i.l.bf16 %v1467_v42  ;;  %1374 = vmatprep.subr.bf16.mxu0 %v1373_v40 }
 0x182   : > { %1354 = vmatpush3.bf16.xpose.msk.msra.mxu1 %vm1715_vm2, %v1349_v22  ;;  %1376 = vmatpush3.bf16.msra.mxu0 %v1373_v40 }
 0x183   : > { %1378 = vmatprep.subr.bf16.mxu0 %v1377_v45  ;;  %1357 = vmatprep.subr.msk.bf16.mxu1 %vm1715_vm2, %v1355_v38  ;;  %v1381_v59 = vpack.c.bf16 %v1469_v47, %v1468_v50 }
 0x184   : > { %v1477_v60 = vpop.permute.xlu1 %1476 }
 0x185   : > { %v1479_v63 = vunpack.i.h.bf16 %v1477_v60  ;;  %v1478_v0 = vunpack.i.l.bf16 %v1477_v60 }
 0x186   : > { %1380 = vmatpush3.bf16.msra.mxu0 %v1377_v45 }
 0x187   : > { %1382 = vmatprep.subr.bf16.mxu0 %v1381_v59  ;;  %v1389_v11 = vpack.c.bf16 %v1479_v63, %v1478_v0 }
 0x18a   : > { %1360 = vmatpush3.bf16.xpose.msk.msra.mxu1 %vm1715_vm2, %v1355_v38  ;;  %1384 = vmatpush3.bf16.msra.mxu0 %v1381_v59 }
 0x18b   : > { %1386 = vmatprep.subr.bf16.mxu0 %v1385_v62  ;;  %1363 = vmatprep.subr.msk.bf16.mxu1 %vm1715_vm2, %v1361_v61 }
 0x18e   : > { %1388 = vmatpush3.bf16.msra.mxu0 %v1385_v62 }
 0x18f   : > { %1390 = vmatprep.subr.bf16.mxu0 %v1389_v11 }
 0x192   : > { %1366 = vmatpush3.bf16.xpose.msk.msra.mxu1 %vm1715_vm2, %v1361_v61  ;;  %1392 = vmatpush3.bf16.msra.mxu0 %v1389_v11 }
 0x193   : > { %1369 = vmatprep.subr.msk.bf16.mxu1 %vm1715_vm2, %v1367_v12 }
 0x19a   : > { %1372 = vmatpush3.bf16.xpose.msk.msra.mxu1 %vm1715_vm2, %v1367_v12 }
 0x1a1   : > { %1246 = vmatmul.mubr.msk.f32.vlgmr.msra.gmra.mrb[0].mxu1 %vm165_vm1, %v1645_v14 }
 0x1a2   : > { %1248 = vmatprep.mubr.msk.f32.mxu1 %vm165_vm1, %v1652_v21 }
 0x1a5   : > { %1249 = vmatmul.mubr.msk.f32.gmra.mrb[2].mxu1 %vm165_vm1, %v1649_v19 }
 0x1a6   : > { %1251 = vmatprep.mubr.msk.f32.mxu1 %vm165_vm1, %v1659_v26 }
 0x1a9   : > { %1252 = vmatmul.mubr.msk.f32.gmra.mrb[4].mxu1 %vm165_vm1, %v1656_v24 }
 0x1aa   : > { %1254 = vmatprep.mubr.msk.f32.mxu1 %vm165_vm1, %v1665_v31 }
 0x1ad   : > { %1255 = vmatmul.mubr.msk.f32.gmra.mrb[6].mxu1 %vm165_vm1, %v1663_v29 }
 0x1ae   : > { %1257 = vmatprep.mubr.msk.f32.mxu1 %vm165_vm1, %v1672_v36 }
 0x1b1   : > { %1258 = vmatmul.mubr.msk.f32.gmra.mrb[8].mxu1 %vm165_vm1, %v1670_v34 }
 0x1b2   : > { %1260 = vmatprep.mubr.msk.f32.mxu1 %vm165_vm1, %v1679_v41 }
 0x1b5   : > { %1261 = vmatmul.mubr.msk.f32.gmra.mrb[10].mxu1 %vm165_vm1, %v1677_v39 }
 0x1b6   : > { %1263 = vmatprep.mubr.msk.f32.mxu1 %vm165_vm1, %v1688_v46 }
 0x1b9   : > { %1264 = vmatmul.mubr.msk.f32.gmra.mrb[12].mxu1 %vm165_vm1, %v1686_v44 }
 0x1ba   : > { %1266 = vmatprep.mubr.msk.f32.mxu1 %vm165_vm1, %v1698_v51 }
 0x1bd   : > { %1267 = vmatmul.mubr.msk.f32.gmra.mrb[14].mxu1 %vm165_vm1, %v1696_v49 }
 0x274   : > { %v1247_v14 = vpop.f32.mrb[0].mxu1 }
 0x275   : > { %v621_v19 = vmul.f32 0.57735026, %v1247_v14  ;;  %v541_v21 = vpop.f32.mrb[1].mxu1 }
 0x276   : > { %v620_v24 = vmul.f32 0.57735026, %v541_v21 }
 0x277   : > { %638 = vmax.xlane.f32.xlu1 %v621_v19 }
 0x278   : > { %636 = vmax.xlane.f32.xlu0 %v620_v24  ;;  %v1250_v26 = vpop.f32.mrb[2].mxu1 }
 0x279   : > { %v623_v29 = vmul.f32 0.57735026, %v1250_v26  ;;  %v551_v31 = vpop.f32.mrb[3].mxu1 }
 0x27a   : > { %v622_v39 = vmul.f32 0.57735026, %v551_v31 }
 0x27c   : > { %642 = vmax.xlane.f32.xlu0 %v623_v29  ;;  %v1253_v34 = vpop.f32.mrb[4].mxu1 }
 0x27d   : > { %v561_v36 = vpop.f32.mrb[5].mxu1  ;;  %v625_v51 = vmul.f32 0.57735026, %v1253_v34 }
 0x27e   : > { %v624_v41 = vmul.f32 0.57735026, %v561_v36 }
 0x280   : > { %640 = vmax.xlane.f32.xlu0 %v622_v39  ;;  %644 = vmax.xlane.f32.xlu1 %v624_v41  ;;  %v1256_v44 = vpop.f32.mrb[6].mxu1 }
 0x281   : > { %v571_v46 = vpop.f32.mrb[7].mxu1  ;;  %v627_v15 = vmul.f32 0.57735026, %v1256_v44 }
 0x282   : > { %v1781_v49 = vmul.f32 0.57735026, %v571_v46 }
 0x284   : > { %646 = vmax.xlane.f32.xlu0 %v625_v51  ;;  %648 = vmax.xlane.f32.xlu1 %v1781_v49  ;;  %v1259_v56 = vpop.f32.mrb[8].mxu1 }
 0x285   : > { %v581_v13 = vpop.f32.mrb[9].mxu1  ;;  %v1787_v20 = vmul.f32 0.57735026, %v1259_v56 }
 0x286   : > { %v1784_v16 = vmul.f32 0.57735026, %v581_v13 }
 0x288   : > { %650 = vmax.xlane.f32.xlu0 %v627_v15  ;;  %652 = vmax.xlane.f32.xlu1 %v1784_v16  ;;  %v1262_v17 = vpop.f32.mrb[10].mxu1 }
 0x289   : > { %v591_v18 = vpop.f32.mrb[11].mxu1  ;;  %v1793_v27 = vmul.f32 0.57735026, %v1262_v17 }
 0x28a   : > { %v1789_v22 = vmul.f32 0.57735026, %v591_v18 }
 0x28c   : > { %654 = vmax.xlane.f32.xlu0 %v1787_v20  ;;  %656 = vmax.xlane.f32.xlu1 %v1789_v22  ;;  %v1265_v23 = vpop.f32.mrb[12].mxu1 }
 0x28d   : > { %v601_v25 = vpop.f32.mrb[13].mxu1  ;;  %v1799_v33 = vmul.f32 0.57735026, %v1265_v23 }
 0x28e   : > { %v1795_v28 = vmul.f32 0.57735026, %v601_v25 }
 0x290   : > { %658 = vmax.xlane.f32.xlu0 %v1793_v27  ;;  %660 = vmax.xlane.f32.xlu1 %v1795_v28  ;;  %v1268_v30 = vpop.f32.mrb[14].mxu1 }
 0x291   : > { %v611_v32 = vpop.f32.mrb[15].mxu1  ;;  %v1805_v37 = vmul.f32 0.57735026, %v1268_v30 }
 0x292   : > { %v1801_v35 = vmul.f32 0.57735026, %v611_v32 }
 0x294   : > { %662 = vmax.xlane.f32.xlu0 %v1799_v33  ;;  %664 = vmax.xlane.f32.xlu1 %v1801_v35 }
 0x298   : > { %666 = vmax.xlane.f32.xlu0 %v1805_v37 }
 0x2a5   : > { %1481 = vrot.lane.b32.xlu1 %v1684_v43, %s1568_s18 }
 0x2ae   : > { %1486 = vrot.lane.b32.xlu0 %v1694_v48, %s1568_s18 }
 0x304   : > { %v639_v38 = vpop.xlane.xlu1 %638 }
 0x305   : > { %v669_v40 = vsub.f32 %v621_v19, %v639_v38  ;;  %v637_v42 = vpop.xlane.xlu0 %636 }
 0x306   : > { %v668_v45 = vsub.f32 %v620_v24, %v637_v42 }
 0x307   : > { %v686_v47 = vmul.f32 1.442695, %v669_v40 }
 0x308   : > { %v684_v50 = vmul.f32 1.442695, %v668_v45 }
 0x309   : > { %1495 = vpow2.f32 %v686_v47  ;;  %v643_v53 = vpop.xlane.xlu0 %642 }
 0x30a   : > { %1497 = vpow2.f32 %v684_v50  ;;  %v671_v54 = vsub.f32 %v623_v29, %v643_v53 }
 0x30c   : > { %v690_v55 = vmul.f32 1.442695, %v671_v54 }
 0x30d   : > { %v641_v57 = vpop.xlane.xlu0 %640  ;;  %v645_v58 = vpop.xlane.xlu1 %644 }
 0x30e   : > { %1499 = vpow2.f32 %v690_v55  ;;  %v670_v59 = vsub.f32 %v622_v39, %v641_v57  ;;  %v672_v60 = vsub.f32 %v624_v41, %v645_v58 }
 0x310   : > { %v688_v43 = vmul.f32 1.442695, %v670_v59  ;;  %v692_v61 = vmul.f32 1.442695, %v672_v60 }
 0x311   : > { %v647_v62 = vpop.xlane.xlu0 %646  ;;  %v649_v48 = vpop.xlane.xlu1 %648 }
 0x312   : > { %1501 = vpow2.f32 %v688_v43  ;;  %v673_v63 = vsub.f32 %v625_v51, %v647_v62  ;;  %v674_v14 = vsub.f32 %v1781_v49, %v649_v48 }
 0x313   : > { %v1812_v0 = vpop.eup %1495  ;;  %1503 = vpow2.f32 %v692_v61 }
 0x314   : > { %v1814_v9 = vpop.eup %1497  ;;  %v694_v10 = vmul.f32 1.442695, %v673_v63  ;;  %718 = vadd.xlane.f32.xlu0 %v1812_v0  ;;  %v696_v31 = vmul.f32 1.442695, %v674_v14 }
 0x315   : > { %v651_v11 = vpop.xlane.xlu0 %650  ;;  %v653_v12 = vpop.xlane.xlu1 %652  ;;  %716 = vadd.xlane.f32.xlu1 %v1814_v9 }
 0x316   : > { %1505 = vpow2.f32 %v694_v10  ;;  %v675_v19 = vsub.f32 %v627_v15, %v651_v11  ;;  %v676_v34 = vsub.f32 %v1784_v16, %v653_v12 }
 0x318   : > { %v1819_v21 = vpop.eup %1499  ;;  %v698_v24 = vmul.f32 1.442695, %v675_v19  ;;  %v700_v46 = vmul.f32 1.442695, %v676_v34 }
 0x319   : > { %v655_v26 = vpop.xlane.xlu0 %654  ;;  %v657_v29 = vpop.xlane.xlu1 %656  ;;  %722 = vadd.xlane.f32.xlu0 %v1819_v21 }
 0x31a   : > { %1507 = vpow2.f32 %v698_v24  ;;  %v678_v51 = vsub.f32 %v1789_v22, %v657_v29 }
 0x31b   : > { %1509 = vpow2.f32 %v696_v31 }
 0x31c   : > { %v1823_v36 = vpop.eup %1501  ;;  %1511 = vpow2.f32 %v700_v46  ;;  %v704_v16 = vmul.f32 1.442695, %v678_v51 }
 0x31d   : > { %v1825_v39 = vpop.eup %1503  ;;  %v659_v41 = vpop.xlane.xlu0 %658  ;;  %720 = vadd.xlane.f32.xlu0 %v1823_v36 }
 0x31e   : > { %v661_v44 = vpop.xlane.xlu1 %660  ;;  %724 = vadd.xlane.f32.xlu1 %v1825_v39  ;;  %1513 = vpow2.f32 %v704_v16  ;;  %v679_v60 = vsub.f32 %v1793_v27, %v659_v41 }
 0x31f   : > { %v680_v56 = vsub.f32 %v1795_v28, %v661_v44 }
 0x320   : > { %v1830_v49 = vpop.eup %1505  ;;  %v706_v43 = vmul.f32 1.442695, %v679_v60  ;;  %v152_v60 = vld [vmem:[%s1603_s16 + $0x40] sm:$0xff] }
 0x321   : > { %v663_v13 = vpop.xlane.xlu0 %662  ;;  %726 = vadd.xlane.f32.xlu0 %v1830_v49  ;;  %v708_v18 = vmul.f32 1.442695, %v680_v56 }
 0x322   : > { %v665_v15 = vpop.xlane.xlu1 %664  ;;  %v681_v61 = vsub.f32 %v1799_v33, %v663_v13 }
 0x323   : > { %v682_v22 = vsub.f32 %v1801_v35, %v665_v15  ;;  %1515 = vpow2.f32 %v708_v18 }
 0x324   : > { %v1834_v17 = vpop.eup %1507  ;;  %v710_v62 = vmul.f32 1.442695, %v681_v61 }
 0x325   : > { %730 = vadd.xlane.f32.xlu0 %v1834_v17  ;;  %v667_v23 = vpop.xlane.xlu0 %666  ;;  %v1838_v38 = vpop.eup %1509  ;;  %v712_v42 = vmul.f32 1.442695, %v682_v22 }
 0x326   : > { %v1482_v25 = vpop.permute.xlu1 %1481  ;;  %v683_v45 = vsub.f32 %v1805_v37, %v667_v23  ;;  %v1842_v53 = vpop.eup %1511 }
 0x327   : > { %v1484_v30 = vunpack.i.h.bf16 %v1482_v25  ;;  %v1483_v32 = vunpack.i.l.bf16 %v1482_v25  ;;  %1517 = vpow2.f32 %v712_v42  ;;  %v1895_v42 = vld [vmem:[%s1603_s16 + $0x30] sm:$0xff] }
 0x328   : > { %v714_v35 = vmul.f32 1.442695, %v683_v45  ;;  %v1847_v55 = vpop.eup %1513 }
 0x329   : > { %v1393_v28 = vpack.c.bf16 %v1484_v30, %v1483_v32  ;;  %728 = vadd.xlane.f32.xlu0 %v1838_v38  ;;  %v1487_v40 = vpop.permute.xlu0 %1486  ;;  %v1888_v30 = vld [vmem:[%s1603_s16 + $0x20] sm:$0xff] }
 0x32a   : > { %v1489_v47 = vunpack.i.h.bf16 %v1487_v40  ;;  %v1488_v50 = vunpack.i.l.bf16 %v1487_v40  ;;  %1519 = vpow2.f32 %v714_v35 }
 0x32b   : > { %1394 = vmatprep.subr.bf16.mxu0 %v1393_v28 }
 0x32c   : > { %1396 = vmatpush3.bf16.msra.mxu0 %v1393_v28  ;;  %v1397_v54 = vpack.c.bf16 %v1489_v47, %v1488_v50 }
 0x32d   : > { %732 = vadd.xlane.f32.xlu0 %v1842_v53  ;;  %v1850_v37 = vpop.eup %1515 }
 0x32e   : > { %1398 = vmatprep.subr.bf16.mxu0 %v1397_v54 }
 0x32f   : > { %1491 = vrot.lane.b32.xlu1 %v1704_v52, %s1568_s18  ;;  %v677_v52 = vsub.f32 %v1787_v20, %v655_v26 }
 0x330   : > { %1400 = vmatpush3.bf16.msra.mxu0 %v1397_v54 }
 0x331   : > { %736 = vadd.xlane.f32.xlu0 %v1847_v55  ;;  %v1853_v57 = vpop.eup %1517  ;;  %v702_v59 = vmul.f32 1.442695, %v677_v52 }
 0x333   : > { %1521 = vpow2.f32 %v702_v59 }
 0x334   : > { %v1856_v58 = vpop.eup %1519  ;;  %1523 = vpow2.f32 %v706_v43 }
 0x335   : > { %740 = vadd.xlane.f32.xlu0 %v1850_v37  ;;  %1525 = vpow2.f32 %v710_v62 }
 0x339   : > { %744 = vadd.xlane.f32.xlu0 %v1853_v57 }
 0x33d   : > { %746 = vadd.xlane.f32.xlu0 %v1856_v58  ;;  %v1862_v48 = vpop.eup %1521 }
 0x33e   : > { %v1865_v63 = vpop.eup %1523 }
 0x33f   : > { %v1868_v10 = vpop.eup %1525 }
 0x353   : > { %734 = vadd.xlane.f32.xlu1 %v1862_v48 }
 0x357   : > { %738 = vadd.xlane.f32.xlu1 %v1865_v63 }
 0x35b   : > { %742 = vadd.xlane.f32.xlu1 %v1868_v10 }
 0x3a1   : > { %v719_v20 = vpop.xlane.xlu0 %718 }
 0x3a2   : > { %v717_v27 = vpop.xlane.xlu1 %716 }
 0x3a3   : > { %1527 = vrcp.f32 %v717_v27  ;;  %v154_v27 = vld [vmem:[%s1603_s16 + $0x50] sm:$0xff] }
 0x3a4   : > { %1529 = vrcp.f32 %v719_v20 }
 0x3a6   : > { %v723_v11 = vpop.xlane.xlu0 %722 }
 0x3aa   : > { %v721_v33 = vpop.xlane.xlu0 %720 }
 0x3ab   : > { %1531 = vrcp.f32 %v721_v33  ;;  %v725_v12 = vpop.xlane.xlu1 %724 }
 0x3ac   : > { %1533 = vrcp.f32 %v723_v11 }
 0x3ad   : > { %v1528_v14 = vpop.eup %1527  ;;  %1535 = vrcp.f32 %v725_v12 }
 0x3ae   : > { %v764_v19 = vmul.f32 %v1528_v14, %v1814_v9  ;;  %v727_v24 = vpop.xlane.xlu0 %726  ;;  %v1530_v44 = vpop.eup %1529  ;;  %v1874_v9 = vld [vmem:[%s1603_s16] sm:$0xff] }
 0x3af   : > { %v1492_v26 = vpop.permute.xlu1 %1491  ;;  %1537 = vrcp.f32 %v727_v24  ;;  %v765_v51 = vmul.f32 %v1530_v44, %v1812_v0  ;;  %v1881_v0 = vld [vmem:[%s1603_s16 + $0x10] sm:$0xff] }
 0x3b0   : > { %v1494_v29 = vunpack.i.h.bf16 %v1492_v26  ;;  %v1493_v31 = vunpack.i.l.bf16 %v1492_v26  ;;  %1301 = vmatprep.mubr.f32.mxu0 %v764_v19  ;;  %v158_v24 = vld [vmem:[%s1603_s16 + $0x70] sm:$0xff] }
 0x3b2   : > { %v1401_v34 = vpack.c.bf16 %v1494_v29, %v1493_v31  ;;  %v731_v41 = vpop.xlane.xlu0 %730 }
 0x3b3   : > { %1539 = vrcp.f32 %v731_v41 }
 0x3b4   : > { %1402 = vmatprep.subr.bf16.mxu0 %v1401_v34 }
 0x3b5   : > { %v1532_v46 = vpop.eup %1531  ;;  %1404 = vmatpush3.bf16.msra.mxu0 %v1401_v34 }
 0x3b6   : > { %v729_v56 = vpop.xlane.xlu0 %728  ;;  %v766_v13 = vmul.f32 %v1532_v46, %v1823_v36  ;;  %v1534_v15 = vpop.eup %1533 }
 0x3b7   : > { %1541 = vrcp.f32 %v729_v56  ;;  %v1536_v16 = vpop.eup %1535  ;;  %v767_v23 = vmul.f32 %v1534_v15, %v1819_v21 }
 0x3b8   : > { %1302 = vmatmul.mubr.f32.vlgmr.msra.gmra.mrb[16].mxu0 %v765_v51  ;;  %v768_v36 = vmul.f32 %v1536_v16, %v1825_v39 }
 0x3b9   : > { %1189 = vmatprep.mubr.msk.f32.mxu0 %vm165_vm1, %v1874_v9  ;;  %v1538_v25 = vpop.eup %1537 }
 0x3ba   : > { %1304 = vmatprep.mubr.f32.mxu0 %v766_v13  ;;  %v733_v18 = vpop.xlane.xlu0 %732  ;;  %v769_v22 = vmul.f32 %v1538_v25, %v1830_v49 }
 0x3bb   : > { %1543 = vrcp.f32 %v733_v18 }
 0x3bc   : > { %1305 = vmatmul.mubr.f32.gmra.mrb[18].mxu0 %v767_v23 }
 0x3bd   : > { %1192 = vmatprep.mubr.msk.f32.mxu0 %vm165_vm1, %v1881_v0  ;;  %v1540_v32 = vpop.eup %1539 }
 0x3be   : > { %1307 = vmatprep.mubr.f32.mxu0 %v768_v36  ;;  %v771_v40 = vmul.f32 %v1540_v32, %v1834_v17  ;;  %v737_v45 = vpop.xlane.xlu0 %736 }
 0x3bf   : > { %1545 = vrcp.f32 %v737_v45 }
 0x3c0   : > { %1308 = vmatmul.mubr.f32.gmra.mrb[20].mxu0 %v769_v22 }
 0x3c1   : > { %v1542_v28 = vpop.eup %1541  ;;  %1195 = vmatprep.mubr.msk.f32.mxu0 %vm165_vm1, %v1888_v30 }
 0x3c2   : > { %v770_v21 = vmul.f32 %v1542_v28, %v1838_v38  ;;  %v741_v47 = vpop.xlane.xlu0 %740 }
 0x3c4   : > { %1310 = vmatprep.mubr.f32.mxu0 %v770_v21 }
 0x3c5   : > { %v1544_v39 = vpop.eup %1543  ;;  %1311 = vmatmul.mubr.f32.gmra.mrb[22].mxu0 %v771_v40 }
 0x3c6   : > { %1198 = vmatprep.mubr.msk.f32.mxu0 %vm165_vm1, %v1895_v42  ;;  %v772_v49 = vmul.f32 %v1544_v39, %v1842_v53  ;;  %v745_v38 = vpop.xlane.xlu0 %744 }
 0x3c8   : > { %1313 = vmatprep.mubr.f32.mxu0 %v772_v49 }
 0x3c9   : > { %v1546_v52 = vpop.eup %1545 }
 0x3ca   : > { %v747_v54 = vpop.xlane.xlu0 %746  ;;  %v774_v61 = vmul.f32 %v1546_v52, %v1847_v55  ;;  %v156_v55 = vld [vmem:[%s1603_s16 + $0x60] sm:$0xff] }
 0x3e0   : > { %v735_v50 = vpop.xlane.xlu1 %734 }
 0x3e1   : > { %1547 = vrcp.f32 %v735_v50 }
 0x3e2   : > { %1549 = vrcp.f32 %v741_v47 }
 0x3e4   : > { %v739_v17 = vpop.xlane.xlu1 %738 }
 0x3e5   : > { %1551 = vrcp.f32 %v739_v17 }
 0x3e6   : > { %1553 = vrcp.f32 %v745_v38 }
 0x3e8   : > { %v743_v35 = vpop.xlane.xlu1 %742 }
 0x3e9   : > { %1555 = vrcp.f32 %v743_v35 }
 0x3ea   : > { %1557 = vrcp.f32 %v747_v54 }
 0x3eb   : > { %v1548_v59 = vpop.eup %1547 }
 0x3ec   : > { %v773_v53 = vmul.f32 %v1548_v59, %v1862_v48  ;;  %v1550_v43 = vpop.eup %1549 }
 0x3ed   : > { %v776_v33 = vmul.f32 %v1550_v43, %v1850_v37 }
 0x3ee   : > { %1314 = vmatmul.mubr.f32.gmra.mrb[24].mxu0 %v773_v53 }
 0x3ef   : > { %v1552_v62 = vpop.eup %1551  ;;  %1201 = vmatprep.mubr.msk.f32.mxu0 %vm165_vm1, %v152_v60 }
 0x3f0   : > { %1316 = vmatprep.mubr.f32.mxu0 %v774_v61  ;;  %v775_v20 = vmul.f32 %v1552_v62, %v1865_v63  ;;  %v1554_v11 = vpop.eup %1553 }
 0x3f1   : > { %v778_v19 = vmul.f32 %v1554_v11, %v1853_v57 }
 0x3f2   : > { %1317 = vmatmul.mubr.f32.gmra.mrb[26].mxu0 %v775_v20 }
 0x3f3   : > { %v1556_v48 = vpop.eup %1555  ;;  %1204 = vmatprep.mubr.msk.f32.mxu0 %vm165_vm1, %v154_v27 }
 0x3f4   : > { %1319 = vmatprep.mubr.f32.mxu0 %v776_v33  ;;  %v777_v12 = vmul.f32 %v1556_v48, %v1868_v10  ;;  %v1558_v14 = vpop.eup %1557 }
 0x3f5   : > { %v779_v63 = vmul.f32 %v1558_v14, %v1856_v58 }
 0x3f6   : > { %1320 = vmatmul.mubr.f32.gmra.mrb[28].mxu0 %v777_v12 }
 0x3f7   : > { %1207 = vmatprep.mubr.msk.f32.mxu0 %vm165_vm1, %v156_v55 }
 0x3f8   : > { %1322 = vmatprep.mubr.f32.mxu0 %v778_v19 }
 0x3fa   : > { %1323 = vmatmul.mubr.f32.gmra.mrb[30].mxu0 %v779_v63 }
 0x3fb   : > { %1210 = vmatprep.mubr.msk.f32.mxu0 %vm165_vm1, %v158_v24 }
 0x48b   : > { %v1303_v37 = vpop.f32.mrb[16].mxu0 }
 0x48c   : > { %v900_v57 = vadd.f32 %v1303_v37, %v1606_v1  ;;  %v894_v58 = vpop.f32.mrb[17].mxu0 }
 0x48d   : > { %v895_v10 = vadd.f32 %v894_v58, %v1874_v9 }
 0x48e   : > { %974 = vst.msk [vmem:[%s1920_s21 + $0x8] sm:$0xff] %vm165_vm1, %v900_v57 }
 0x48f   : > { %973 = vst.msk [vmem:[%s1920_s21] sm:$0xff] %vm165_vm1, %v895_v10  ;;  %v1306_v26 = vpop.f32.mrb[18].mxu0 }
 0x490   : > { %v910_v29 = vadd.f32 %v1306_v26, %v1611_v2  ;;  %v904_v31 = vpop.f32.mrb[19].mxu0 }
 0x491   : > { %v905_v34 = vadd.f32 %v904_v31, %v1881_v0 }
 0x492   : > { %976 = vst.msk [vmem:[%s1920_s21 + $0x18] sm:$0xff] %vm165_vm1, %v910_v29 }
 0x493   : > { %975 = vst.msk [vmem:[%s1920_s21 + $0x10] sm:$0xff] %vm165_vm1, %v905_v34  ;;  %v1309_v1 = vpop.f32.mrb[20].mxu0 }
 0x494   : > { %v920_v41 = vadd.f32 %v1309_v1, %v1616_v3  ;;  %v914_v44 = vpop.f32.mrb[21].mxu0 }
 0x495   : > { %v915_v46 = vadd.f32 %v914_v44, %v1888_v30 }
 0x496   : > { %978 = vst.msk [vmem:[%s1920_s21 + $0x28] sm:$0xff] %vm165_vm1, %v920_v41 }
 0x497   : > { %977 = vst.msk [vmem:[%s1920_s21 + $0x20] sm:$0xff] %vm165_vm1, %v915_v46 }
 0x498   : > { %v1312_v2 = vpop.f32.mrb[22].mxu0 }
 0x499   : > { %v930_v51 = vadd.f32 %v1312_v2, %v1621_v4  ;;  %v924_v56 = vpop.f32.mrb[23].mxu0 }
 0x49a   : > { %v925_v9 = vadd.f32 %v924_v56, %v1895_v42 }
 0x49b   : > { %980 = vst.msk [vmem:[%s1920_s21 + $0x38] sm:$0xff] %vm165_vm1, %v930_v51 }
 0x49c   : > { %979 = vst.msk [vmem:[%s1920_s21 + $0x30] sm:$0xff] %vm165_vm1, %v925_v9 }
 0x4c1   : > { %v1315_v3 = vpop.f32.mrb[24].mxu0 }
 0x4c2   : > { %v940_v13 = vadd.f32 %v1315_v3, %v1626_v5  ;;  %v934_v15 = vpop.f32.mrb[25].mxu0 }
 0x4c3   : > { %v935_v16 = vadd.f32 %v934_v15, %v152_v60 }
 0x4c4   : > { %982 = vst.msk [vmem:[%s1920_s21 + $0x48] sm:$0xff] %vm165_vm1, %v940_v13 }
 0x4c5   : > { %981 = vst.msk [vmem:[%s1920_s21 + $0x40] sm:$0xff] %vm165_vm1, %v935_v16  ;;  %v1318_v4 = vpop.f32.mrb[26].mxu0 }
 0x4c6   : > { %v950_v18 = vadd.f32 %v1318_v4, %v1631_v6  ;;  %v944_v23 = vpop.f32.mrb[27].mxu0 }
 0x4c7   : > { %v945_v0 = vadd.f32 %v944_v23, %v154_v27 }
 0x4c8   : > { %984 = vst.msk [vmem:[%s1920_s21 + $0x58] sm:$0xff] %vm165_vm1, %v950_v18 }
 0x4c9   : > { %983 = vst.msk [vmem:[%s1920_s21 + $0x50] sm:$0xff] %vm165_vm1, %v945_v0  ;;  %v1321_v25 = vpop.f32.mrb[28].mxu0 }
 0x4ca   : > { %v960_v5 = vadd.f32 %v1321_v25, %v1636_v7  ;;  %v954_v36 = vpop.f32.mrb[29].mxu0 }
 0x4cb   : > { %v955_v22 = vadd.f32 %v954_v36, %v156_v55 }
 0x4cc   : > { %986 = vst.msk [vmem:[%s1920_s21 + $0x68] sm:$0xff] %vm165_vm1, %v960_v5 }
 0x4cd   : > { %985 = vst.msk [vmem:[%s1920_s21 + $0x60] sm:$0xff] %vm165_vm1, %v955_v22  ;;  %v1324_v30 = vpop.f32.mrb[30].mxu0 }
 0x4ce   : > { %v970_v32 = vadd.f32 %v1324_v30, %v1641_v8  ;;  %v964_v6 = vpop.f32.mrb[31].mxu0 }
 0x4cf   : > { %v965_v28 = vadd.f32 %v964_v6, %v158_v24 }
 0x4d0   : > { %988 = vst.msk [vmem:[%s1920_s21 + $0x78] sm:$0xff] %vm165_vm1, %v970_v32 }
 0x4d1   : > { %987 = vst.msk [vmem:[%s1920_s21 + $0x70] sm:$0xff] %vm165_vm1, %v965_v28 }
 0x4d2 PF: > { %s12_s9 = sadd.s32 1, %s1565_s9  }
 0x4d3   : > { %p9_p4 = scmp.ge.s32.totalorder %s12_s9, 4  }
 0x4d5   :  { %11 = sbr.rel (!%p9_p4) target bundleno = 1 (0x1), region = 58 }

</bundles_post_ra>
